<compile_context>
chip_gen: v5e
topology: v5e:2x2
jax: 0.10.0
libtpu: 0.0.40
codegen_flags: <defaults>
</compile_context>

<pallas_src>
import functools

import numpy as np
import jax
import jax.numpy as jnp
from jax.experimental import pallas as pl
from jax.experimental.pallas import tpu as pltpu


def _round_up(x, m):
    return ((x + m - 1) // m) * m


def _conv_pool_stats_kernel(taps_ref, w_ref, y_ref, sum_ref, sq_ref, *,
                            cin, cc_pad):
    """Per (batch, P-tile): conv matmul + 2x2 max-pool + lane-reduced BN stats."""
    taps = taps_ref[0]                                     # (9*Cin, PT) bf16

    # 3x3 / stride-2 conv as one MXU matmul over the im2col'd tap rows.
    # bf16 x bf16 inputs, f32 accumulation (single MXU pass).
    conv = jnp.dot(w_ref[...], taps,
                   preferred_element_type=jnp.float32)     # (Cc_pad, PT) f32

    # 2x2 / stride-2 max-pool == elementwise max of the 4 unshifted phase
    # taps (kh,kw) in {(1,1),(1,2),(2,1),(2,2)} -> tap indices 4,5,7,8.
    ee = taps[4 * cin:5 * cin, :]
    eo = taps[5 * cin:6 * cin, :]
    oe = taps[7 * cin:8 * cin, :]
    oo = taps[8 * cin:9 * cin, :]
    pool = jnp.maximum(jnp.maximum(ee, eo), jnp.maximum(oe, oo))  # (Cin, PT) bf16

    # Lane-dense, sublane-aligned writes into channel ranges (no concat):
    # conv occupies rows [0:Cc_pad) (Cc_pad multiple of 16 -> unmasked vst),
    # pool occupies rows [Cc_pad:).
    y_ref[0, :cc_pad, :] = conv.astype(y_ref.dtype)
    y_ref[0, cc_pad:, :] = pool.astype(y_ref.dtype)

    # BatchNorm partial statistics: cross-lane reductions (XLU) into a tiny
    # per-(batch, tile) block -> no full-tile stat stores / RMW, and the
    # spatial-tile grid axis stays fully parallel.
    pool32 = pool.astype(jnp.float32)
    sum_ref[0, 0, :cc_pad, :] = jnp.sum(conv, axis=-1, keepdims=True)
    sum_ref[0, 0, cc_pad:, :] = jnp.sum(pool32, axis=-1, keepdims=True)
    sq_ref[0, 0, :cc_pad, :] = jnp.sum(conv * conv, axis=-1, keepdims=True)
    sq_ref[0, 0, cc_pad:, :] = jnp.sum(pool32 * pool32, axis=-1, keepdims=True)


def _bn_relu_kernel(y_ref, scale_ref, shift_ref, o_ref):
    # (Cout_pad, PT) bf16 -> f32 FMA with lane-broadcast (Cout_pad, 1) params.
    y = y_ref[0].astype(jnp.float32)
    o_ref[0] = jnp.maximum(y * scale_ref[...] + shift_ref[...], 0.0)


def downsampler_block(x_nchw, conv_w, conv_b, gamma, beta, eps=1e-3):
    # conv_b is accepted for API parity but unused: a per-channel constant
    # bias is exactly cancelled by the batch-stat BN mean subtraction.
    del conv_b

    N, Cin, H, W = x_nchw.shape
    assert H % 2 == 0 and W % 2 == 0, "even spatial dims required (as in PyTorch module)"
    Cc = conv_w.shape[0]                     # out_channel - in_channel
    Cout = Cc + Cin
    Ho, Wo = H // 2, W // 2
    P = Ho * Wo

    # Conv channels padded to a bf16 sublane pack (16) so the conv/pool
    # split is on an aligned boundary; pool channels follow immediately.
    Cc_pad = _round_up(Cc, 16)
    Cout_pad = Cc_pad + Cin

    # Spatial (lane) tile: multiple of 128, up to 2048, auto-shrunk so the
    # double-buffered bf16 working set stays well under the VMEM request.
    PT = 2048
    while PT > 256 and 4 * (9 * Cin + Cout_pad) * PT > (24 << 20):
        PT //= 2
    PT = min(PT, _round_up(P, 128))
    nT = -(-P // PT)
    P_pad = nT * PT

    # --- thin XLA glue: bf16 taps + bf16 weight matrix --------------------
    # taps[:, k*Cin+ci, i*Wo+j] = xpad[:, ci, 2i+kh, 2j+kw], k = kh*3+kw.
    xp = jnp.pad(x_nchw.astype(jnp.bfloat16), ((0, 0), (0, 0), (1, 1), (1, 1)))
    tap_list = [xp[:, :, kh:kh + 2 * Ho:2, kw:kw + 2 * Wo:2]
                for kh in range(3) for kw in range(3)]
    taps = jnp.stack(tap_list, axis=1).reshape(N, 9 * Cin, P)
    if P_pad != P:
        # Zero lanes keep conv/pool outputs and BN partial sums exact
        # (no bias, max of zeros = 0); padded lanes are sliced off at the end.
        taps = jnp.pad(taps, ((0, 0), (0, 0), (0, P_pad - P)))

    # (Cc, Cin, 3, 3) -> (Cc_pad, 9*Cin), column index = (kh*3+kw)*Cin + ci,
    # zero rows for the padded conv channels.
    w_mat = jnp.transpose(conv_w, (0, 2, 3, 1)).reshape(Cc, 9 * Cin)
    if Cc_pad != Cc:
        w_mat = jnp.pad(w_mat, ((0, Cc_pad - Cc), (0, 0)))
    w_mat = w_mat.astype(jnp.bfloat16)

    cparams = pltpu.CompilerParams(
        dimension_semantics=("parallel", "parallel"),
        vmem_limit_bytes=40 * 1024 * 1024)

    # --- kernel 1: conv + pool + per-tile BN partial stats ----------------
    kernel1 = functools.partial(_conv_pool_stats_kernel, cin=Cin, cc_pad=Cc_pad)
    y, psum, psq = pl.pallas_call(
        kernel1,
        out_shape=(
            jax.ShapeDtypeStruct((N, Cout_pad, P_pad), jnp.bfloat16),  # pre-BN y
            jax.ShapeDtypeStruct((N, nT, Cout_pad, 1), jnp.float32),   # partial sum
            jax.ShapeDtypeStruct((N, nT, Cout_pad, 1), jnp.float32),   # partial sumsq
        ),
        grid=(N, nT),
        in_specs=[
            pl.BlockSpec((1, 9 * Cin, PT), lambda n, t: (n, 0, t)),
            pl.BlockSpec((Cc_pad, 9 * Cin), lambda n, t: (0, 0)),      # VMEM-resident
        ],
        out_specs=(
            pl.BlockSpec((1, Cout_pad, PT), lambda n, t: (n, 0, t)),
            pl.BlockSpec((1, 1, Cout_pad, 1), lambda n, t: (n, t, 0, 0)),
            pl.BlockSpec((1, 1, Cout_pad, 1), lambda n, t: (n, t, 0, 0)),
        ),
        compiler_params=cparams,
    )(taps, w_mat)

    # --- tiny per-channel finalize (plain XLA): mean/var -> scale/shift ---
    count = float(N * P)
    s1 = jnp.sum(psum[..., 0], axis=(0, 1))                # (Cout_pad,)
    s2 = jnp.sum(psq[..., 0], axis=(0, 1))
    mean = s1 / count
    var = jnp.maximum(s2 / count - mean * mean, 0.0)       # biased, BN training mode

    gamma32 = gamma.astype(jnp.float32)
    beta32 = beta.astype(jnp.float32)
    gamma_p = jnp.zeros((Cout_pad,), jnp.float32)
    gamma_p = gamma_p.at[:Cc].set(gamma32[:Cc]).at[Cc_pad:].set(gamma32[Cc:])
    beta_p = jnp.zeros((Cout_pad,), jnp.float32)
    beta_p = beta_p.at[:Cc].set(beta32[:Cc]).at[Cc_pad:].set(beta32[Cc:])

    scale = gamma_p * jax.lax.rsqrt(var + eps)
    shift = beta_p - mean * scale

    # --- kernel 2: fused scale * y + shift, ReLU (pure streaming) ---------
    out = pl.pallas_call(
        _bn_relu_kernel,
        out_shape=jax.ShapeDtypeStruct((N, Cout_pad, P_pad), jnp.float32),
        grid=(N, nT),
        in_specs=[
            pl.BlockSpec((1, Cout_pad, PT), lambda n, t: (n, 0, t)),
            pl.BlockSpec((Cout_pad, 1), lambda n, t: (0, 0)),
            pl.BlockSpec((Cout_pad, 1), lambda n, t: (0, 0)),
        ],
        out_specs=pl.BlockSpec((1, Cout_pad, PT), lambda n, t: (n, 0, t)),
        compiler_params=cparams,
    )(y, scale.reshape(Cout_pad, 1), shift.reshape(Cout_pad, 1))

    # Already channel-first: drop channel / spatial padding, unflatten -> NCHW.
    if Cc_pad == Cc:
        res = out[:, :, :P]
    else:
        res = jnp.concatenate([out[:, :Cc, :P], out[:, Cc_pad:, :P]], axis=1)
    return res.reshape(N, Cout, Ho, Wo)


def _reference(x, w, b, gamma, beta, eps):
    conv = jax.lax.conv_general_dilated(
        x, w, window_strides=(2, 2), padding=((1, 1), (1, 1)),
        dimension_numbers=("NCHW", "OIHW", "NCHW"),
        precision=jax.lax.Precision.HIGHEST)
    conv = conv + b[None, :, None, None]
    pool = jax.lax.reduce_window(x, -jnp.inf, jax.lax.max,
                                 (1, 1, 2, 2), (1, 1, 2, 2), "VALID")
    y = jnp.concatenate([conv, pool], axis=1)
    mean = jnp.mean(y, axis=(0, 2, 3), keepdims=True)
    var = jnp.mean((y - mean) ** 2, axis=(0, 2, 3), keepdims=True)
    out = ((y - mean) * jax.lax.rsqrt(var + eps)
           * gamma[None, :, None, None] + beta[None, :, None, None])
    return jnp.maximum(out, 0.0)


if __name__ == "__main__":
    key = jax.random.PRNGKey(0)
    k1, k2, k3, k4, k5 = jax.random.split(key, 5)

    N, Cin, H, W = 2, 4, 16, 16
    Cout = 8                    # DownsamplerBlock(in_channel=4, out_channel=8)
    Cc = Cout - Cin

    x = jax.random.normal(k1, (N, Cin, H, W), jnp.float32)
    conv_w = 0.1 * jax.random.normal(k2, (Cc, Cin, 3, 3), jnp.float32)
    conv_b = 0.1 * jax.random.normal(k3, (Cc,), jnp.float32)
    gamma = 1.0 + 0.1 * jax.random.normal(k4, (Cout,), jnp.float32)
    beta = 0.1 * jax.random.normal(k5, (Cout,), jnp.float32)

    fn = jax.jit(downsampler_block)
    out = jax.block_until_ready(fn(x, conv_w, conv_b, gamma, beta))

    # bf16 taps / weights / pre-BN intermediate -> compare against the exact
    # f32 reference with a correspondingly loosened tolerance (BN-normalized
    # bf16 rounding errors are a few 1e-2 absolute at worst).
    ref = _reference(x, conv_w, conv_b, gamma, beta, 1e-3)
    np.testing.assert_allclose(np.asarray(out), np.asarray(ref),
                               rtol=5e-2, atol=5e-2)
    print("KERNEL_OK")
</pallas_src>

<mosaic_0001>
module attributes {stable_mosaic.version = 11 : i64} {
  func.func @_conv_pool_stats_kernel(%arg0: i32, %arg1: i32, %arg2: memref<1x36x128xbf16, #tpu.memory_space<vmem>>, %arg3: memref<16x36xbf16, #tpu.memory_space<vmem>>, %arg4: memref<1x20x128xbf16, #tpu.memory_space<vmem>>, %arg5: memref<1x1x20x1xf32, #tpu.memory_space<vmem>>, %arg6: memref<1x1x20x1xf32, #tpu.memory_space<vmem>>) attributes {dimension_semantics = [#tpu.dimension_semantics<parallel>, #tpu.dimension_semantics<parallel>], iteration_bounds = array<i64: 2, 1>, scalar_prefetch = 0 : i64, scratch_operands = 0 : i64, tpu.core_type = #tpu.core_type<tc>, window_params = [{transform_indices = @transform_0, window_bounds = array<i64: 1, 36, 128>}, {pipeline_mode = #tpu.pipeline_mode<synchronous>, transform_indices = @transform_1, window_bounds = array<i64: 16, 36>}, {transform_indices = @transform_2, window_bounds = array<i64: 1, 20, 128>}, {transform_indices = @transform_3, window_bounds = array<i64: 1, 1, 20, 1>}, {transform_indices = @transform_4, window_bounds = array<i64: 1, 1, 20, 1>}]} {
    %c0 = arith.constant 0 : index
    %c0_0 = arith.constant 0 : index
    %c0_1 = arith.constant 0 : index
    %0 = vector.load %arg2[%c0, %c0_0, %c0_1] : memref<1x36x128xbf16, #tpu.memory_space<vmem>>, vector<1x36x128xbf16>
    %1 = vector.shape_cast %0 : vector<1x36x128xbf16> to vector<36x128xbf16>
    %c0_2 = arith.constant 0 : index
    %c0_3 = arith.constant 0 : index
    %2 = vector.load %arg3[%c0_2, %c0_3] : memref<16x36xbf16, #tpu.memory_space<vmem>>, vector<16x36xbf16>
    %cst = arith.constant dense<0.000000e+00> : vector<16x128xf32>
    %3 = tpu.matmul %2, %1, %cst {dimension_numbers = #tpu.dot_dimension_numbers<[1], [0], [0], [1], [0, 0, 1, 1], [], []>} : vector<16x36xbf16>, vector<36x128xbf16>, vector<16x128xf32> -> vector<16x128xf32>
    %4 = vector.extract_strided_slice %1 {offsets = [16, 0], sizes = [4, 128], strides = [1, 1]} : vector<36x128xbf16> to vector<4x128xbf16>
    %5 = vector.extract_strided_slice %1 {offsets = [20, 0], sizes = [4, 128], strides = [1, 1]} : vector<36x128xbf16> to vector<4x128xbf16>
    %6 = vector.extract_strided_slice %1 {offsets = [28, 0], sizes = [4, 128], strides = [1, 1]} : vector<36x128xbf16> to vector<4x128xbf16>
    %7 = vector.extract_strided_slice %1 {offsets = [32, 0], sizes = [4, 128], strides = [1, 1]} : vector<36x128xbf16> to vector<4x128xbf16>
    %8 = arith.maximumf %4, %5 : vector<4x128xbf16>
    %9 = arith.maximumf %6, %7 : vector<4x128xbf16>
    %10 = arith.maximumf %8, %9 : vector<4x128xbf16>
    %11 = arith.truncf %3 : vector<16x128xf32> to vector<16x128xbf16>
    %c0_4 = arith.constant 0 : index
    %c0_5 = arith.constant 0 : index
    %c0_6 = arith.constant 0 : index
    %12 = vector.load %arg4[%c0_4, %c0_5, %c0_6] : memref<1x20x128xbf16, #tpu.memory_space<vmem>>, vector<1x16x128xbf16>
    %13 = vector.shape_cast %12 : vector<1x16x128xbf16> to vector<16x128xbf16>
    %14 = vector.shape_cast %11 : vector<16x128xbf16> to vector<1x16x128xbf16>
    tpu.vector_store %arg4[%c0_4, %c0_5, %c0_6], %14 {strides = array<i32>} : memref<1x20x128xbf16, #tpu.memory_space<vmem>>, vector<1x16x128xbf16>,
    %c0_7 = arith.constant 0 : index
    %c16 = arith.constant 16 : index
    %c0_8 = arith.constant 0 : index
    %15 = vector.load %arg4[%c0_7, %c16, %c0_8] : memref<1x20x128xbf16, #tpu.memory_space<vmem>>, vector<1x4x128xbf16>
    %16 = vector.shape_cast %15 : vector<1x4x128xbf16> to vector<4x128xbf16>
    %17 = vector.shape_cast %10 : vector<4x128xbf16> to vector<1x4x128xbf16>
    tpu.vector_store %arg4[%c0_7, %c16, %c0_8], %17 {strides = array<i32>} : memref<1x20x128xbf16, #tpu.memory_space<vmem>>, vector<1x4x128xbf16>,
    %18 = arith.extf %10 : vector<4x128xbf16> to vector<4x128xf32>
    %cst_9 = arith.constant dense<0.000000e+00> : vector<16xf32>
    %19 = vector.multi_reduction <add>, %3, %cst_9 [1] : vector<16x128xf32> to vector<16xf32>
    %20 = vector.shape_cast %19 : vector<16xf32> to vector<16x1xf32>
    %c0_10 = arith.constant 0 : index
    %c0_11 = arith.constant 0 : index
    %c0_12 = arith.constant 0 : index
    %c0_13 = arith.constant 0 : index
    %21 = vector.load %arg5[%c0_10, %c0_11, %c0_12, %c0_13] : memref<1x1x20x1xf32, #tpu.memory_space<vmem>>, vector<1x1x16x1xf32>
    %22 = vector.shape_cast %21 : vector<1x1x16x1xf32> to vector<16x1xf32>
    %23 = vector.shape_cast %20 : vector<16x1xf32> to vector<1x1x16x1xf32>
    tpu.vector_store %arg5[%c0_10, %c0_11, %c0_12, %c0_13], %23 {strides = array<i32>} : memref<1x1x20x1xf32, #tpu.memory_space<vmem>>, vector<1x1x16x1xf32>,
    %cst_14 = arith.constant dense<0.000000e+00> : vector<4xf32>
    %24 = vector.multi_reduction <add>, %18, %cst_14 [1] : vector<4x128xf32> to vector<4xf32>
    %25 = vector.shape_cast %24 : vector<4xf32> to vector<4x1xf32>
    %c0_15 = arith.constant 0 : index
    %c0_16 = arith.constant 0 : index
    %c16_17 = arith.constant 16 : index
    %c0_18 = arith.constant 0 : index
    %26 = vector.load %arg5[%c0_15, %c0_16, %c16_17, %c0_18] : memref<1x1x20x1xf32, #tpu.memory_space<vmem>>, vector<1x1x4x1xf32>
    %27 = vector.shape_cast %26 : vector<1x1x4x1xf32> to vector<4x1xf32>
    %28 = vector.shape_cast %25 : vector<4x1xf32> to vector<1x1x4x1xf32>
    tpu.vector_store %arg5[%c0_15, %c0_16, %c16_17, %c0_18], %28 {strides = array<i32>} : memref<1x1x20x1xf32, #tpu.memory_space<vmem>>, vector<1x1x4x1xf32>,
    %29 = arith.mulf %3, %3 : vector<16x128xf32>
    %cst_19 = arith.constant dense<0.000000e+00> : vector<16xf32>
    %30 = vector.multi_reduction <add>, %29, %cst_19 [1] : vector<16x128xf32> to vector<16xf32>
    %31 = vector.shape_cast %30 : vector<16xf32> to vector<16x1xf32>
    %c0_20 = arith.constant 0 : index
    %c0_21 = arith.constant 0 : index
    %c0_22 = arith.constant 0 : index
    %c0_23 = arith.constant 0 : index
    %32 = vector.load %arg6[%c0_20, %c0_21, %c0_22, %c0_23] : memref<1x1x20x1xf32, #tpu.memory_space<vmem>>, vector<1x1x16x1xf32>
    %33 = vector.shape_cast %32 : vector<1x1x16x1xf32> to vector<16x1xf32>
    %34 = vector.shape_cast %31 : vector<16x1xf32> to vector<1x1x16x1xf32>
    tpu.vector_store %arg6[%c0_20, %c0_21, %c0_22, %c0_23], %34 {strides = array<i32>} : memref<1x1x20x1xf32, #tpu.memory_space<vmem>>, vector<1x1x16x1xf32>,
    %35 = arith.mulf %18, %18 : vector<4x128xf32>
    %cst_24 = arith.constant dense<0.000000e+00> : vector<4xf32>
    %36 = vector.multi_reduction <add>, %35, %cst_24 [1] : vector<4x128xf32> to vector<4xf32>
    %37 = vector.shape_cast %36 : vector<4xf32> to vector<4x1xf32>
    %c0_25 = arith.constant 0 : index
    %c0_26 = arith.constant 0 : index
    %c16_27 = arith.constant 16 : index
    %c0_28 = arith.constant 0 : index
    %38 = vector.load %arg6[%c0_25, %c0_26, %c16_27, %c0_28] : memref<1x1x20x1xf32, #tpu.memory_space<vmem>>, vector<1x1x4x1xf32>
    %39 = vector.shape_cast %38 : vector<1x1x4x1xf32> to vector<4x1xf32>
    %40 = vector.shape_cast %37 : vector<4x1xf32> to vector<1x1x4x1xf32>
    tpu.vector_store %arg6[%c0_25, %c0_26, %c16_27, %c0_28], %40 {strides = array<i32>} : memref<1x1x20x1xf32, #tpu.memory_space<vmem>>, vector<1x1x4x1xf32>,
    return
  }
  func.func @transform_0(%arg0: i32, %arg1: i32) -> (i32, i32, i32) {
    %c0_i32 = arith.constant 0 : i32
    %c0_i32_0 = arith.constant 0 : i32
    return %arg0, %c0_i32, %arg1 : i32, i32, i32
  }
  func.func @transform_1(%arg0: i32, %arg1: i32) -> (i32, i32) {
    %c0_i32 = arith.constant 0 : i32
    %c0_i32_0 = arith.constant 0 : i32
    %c0_i32_1 = arith.constant 0 : i32
    return %c0_i32, %c0_i32_0 : i32, i32
  }
  func.func @transform_2(%arg0: i32, %arg1: i32) -> (i32, i32, i32) {
    %c0_i32 = arith.constant 0 : i32
    %c0_i32_0 = arith.constant 0 : i32
    return %arg0, %c0_i32, %arg1 : i32, i32, i32
  }
  func.func @transform_3(%arg0: i32, %arg1: i32) -> (i32, i32, i32, i32) {
    %c0_i32 = arith.constant 0 : i32
    %c0_i32_0 = arith.constant 0 : i32
    %c0_i32_1 = arith.constant 0 : i32
    return %arg0, %arg1, %c0_i32, %c0_i32_0 : i32, i32, i32, i32
  }
  func.func @transform_4(%arg0: i32, %arg1: i32) -> (i32, i32, i32, i32) {
    %c0_i32 = arith.constant 0 : i32
    %c0_i32_0 = arith.constant 0 : i32
    %c0_i32_1 = arith.constant 0 : i32
    return %arg0, %arg1, %c0_i32, %c0_i32_0 : i32, i32, i32, i32
  }
}

module attributes {stable_mosaic.version = 11 : i64} {
  func.func @_bn_relu_kernel(%arg0: i32, %arg1: i32, %arg2: memref<1x20x128xbf16, #tpu.memory_space<vmem>>, %arg3: memref<20x1xf32, #tpu.memory_space<vmem>>, %arg4: memref<20x1xf32, #tpu.memory_space<vmem>>, %arg5: memref<1x20x128xf32, #tpu.memory_space<vmem>>) attributes {dimension_semantics = [#tpu.dimension_semantics<parallel>, #tpu.dimension_semantics<parallel>], iteration_bounds = array<i64: 2, 1>, scalar_prefetch = 0 : i64, scratch_operands = 0 : i64, tpu.core_type = #tpu.core_type<tc>, window_params = [{transform_indices = @transform_0, window_bounds = array<i64: 1, 20, 128>}, {pipeline_mode = #tpu.pipeline_mode<synchronous>, transform_indices = @transform_1, window_bounds = array<i64: 20, 1>}, {pipeline_mode = #tpu.pipeline_mode<synchronous>, transform_indices = @transform_2, window_bounds = array<i64: 20, 1>}, {transform_indices = @transform_3, window_bounds = array<i64: 1, 20, 128>}]} {
    %c0 = arith.constant 0 : index
    %c0_0 = arith.constant 0 : index
    %c0_1 = arith.constant 0 : index
    %0 = vector.load %arg2[%c0, %c0_0, %c0_1] : memref<1x20x128xbf16, #tpu.memory_space<vmem>>, vector<1x20x128xbf16>
    %1 = vector.shape_cast %0 : vector<1x20x128xbf16> to vector<20x128xbf16>
    %2 = arith.extf %1 : vector<20x128xbf16> to vector<20x128xf32>
    %c0_2 = arith.constant 0 : index
    %c0_3 = arith.constant 0 : index
    %3 = vector.load %arg3[%c0_2, %c0_3] : memref<20x1xf32, #tpu.memory_space<vmem>>, vector<20x1xf32>
    %4 = vector.broadcast %3 : vector<20x1xf32> to vector<20x128xf32>
    %5 = arith.mulf %2, %4 : vector<20x128xf32>
    %c0_4 = arith.constant 0 : index
    %c0_5 = arith.constant 0 : index
    %6 = vector.load %arg4[%c0_4, %c0_5] : memref<20x1xf32, #tpu.memory_space<vmem>>, vector<20x1xf32>
    %7 = vector.broadcast %6 : vector<20x1xf32> to vector<20x128xf32>
    %8 = arith.addf %5, %7 : vector<20x128xf32>
    %cst = arith.constant 0.000000e+00 : f32
    %9 = vector.broadcast %cst : f32 to vector<20x128xf32>
    %10 = arith.maximumf %8, %9 : vector<20x128xf32>
    %c0_6 = arith.constant 0 : index
    %c0_7 = arith.constant 0 : index
    %c0_8 = arith.constant 0 : index
    %11 = vector.load %arg5[%c0_6, %c0_7, %c0_8] : memref<1x20x128xf32, #tpu.memory_space<vmem>>, vector<1x20x128xf32>
    %12 = vector.shape_cast %11 : vector<1x20x128xf32> to vector<20x128xf32>
    %13 = vector.shape_cast %10 : vector<20x128xf32> to vector<1x20x128xf32>
    tpu.vector_store %arg5[%c0_6, %c0_7, %c0_8], %13 {strides = array<i32>} : memref<1x20x128xf32, #tpu.memory_space<vmem>>, vector<1x20x128xf32>,
    return
  }
  func.func @transform_0(%arg0: i32, %arg1: i32) -> (i32, i32, i32) {
    %c0_i32 = arith.constant 0 : i32
    %c0_i32_0 = arith.constant 0 : i32
    return %arg0, %c0_i32, %arg1 : i32, i32, i32
  }
  func.func @transform_1(%arg0: i32, %arg1: i32) -> (i32, i32) {
    %c0_i32 = arith.constant 0 : i32
    %c0_i32_0 = arith.constant 0 : i32
    %c0_i32_1 = arith.constant 0 : i32
    return %c0_i32, %c0_i32_0 : i32, i32
  }
  func.func @transform_2(%arg0: i32, %arg1: i32) -> (i32, i32) {
    %c0_i32 = arith.constant 0 : i32
    %c0_i32_0 = arith.constant 0 : i32
    %c0_i32_1 = arith.constant 0 : i32
    return %c0_i32, %c0_i32_0 : i32, i32
  }
  func.func @transform_3(%arg0: i32, %arg1: i32) -> (i32, i32, i32) {
    %c0_i32 = arith.constant 0 : i32
    %c0_i32_0 = arith.constant 0 : i32
    return %arg0, %c0_i32, %arg1 : i32, i32, i32
  }
}

</mosaic_0001>

<bundles_post_ra>
// kernel: downsampler_block.2
= control target key start
LH: loop header
LB: loop body
LE: loop exit
PB: predicated region body
PF: predicated region fallthrough
CT: control target
= control target key end

     0   :  { %s673_s15 = smov 0   ;;  %s675_s16 = smov 0   ;;  %s724_s0 = inlined_call_operand.vmem [shape: bf16[2,36,128], index: 0, kind: input, shape index: {}]   ;;  %s725_s1 = inlined_call_operand.vmem [shape: bf16[16,36], index: 1, kind: input, shape index: {}]   ;;  %s726_s2 = inlined_call_operand.vmem [shape: bf16[2,20,128], index: 2, kind: output, shape index: {0}]   ;;  %s727_s3 = inlined_call_operand.vmem [shape: f32[2,1,20,1], index: 3, kind: output, shape index: {1}]   ;;  %s728_s4 = inlined_call_operand.vmem [shape: f32[2,1,20,1], index: 4, kind: output, shape index: {2}]  }
   0x1   :  { %s677_s17 = smov 0  }
   0x2 LB: > { %s27_s18 = sadd.s32 1, %s642_s16  ;;  %p569_p0 = scmp.ge.s32.totalorder %s646_s17, 1  ;;  %s646_s17 = sphi %s677_s17, %s15_s17   ;;  %s642_s16 = sphi %s675_s16, %s730_s16   ;;  %s638_s15 = sphi %s673_s15, %s729_s15  }
   0x3   : > { %p29_p1 = scmp.ge.s32.totalorder %s27_s18, 2  ;;  %p190_p2 = scmp.lt.s32.totalorder %s646_s17, 3 }
   0x5   : > { %s732_s18 = smov (%p29_p1, %s27_s18), 0  ;;  %p191_p3 = pnand %p569_p0, %p190_p2 }
   0x6   : > { %p240_p4 = scmp.lt.s32.totalorder (!%p191_p3), %s638_s15, 1 }
   0x7   : > { %194 = sbr.rel (%p191_p3) target bundleno = 294 (0x126), region = 28 }
   0xc   : > { %s734_s15 = smov (!%p240_p4, %s638_s15), 1  ;;  %vm306_vm0 = vcmask 1041408   ;;  %vm357_vm1 = vcmask 1043456   ;;  %v591_v17 = vld [vmem:[%s725_s1] sm:$0xff]  ;;  %vm302_vm2 = vcmask 293888   ;;  %vm361_vm3 = vcmask 3072  }
   0xd   : > { %s597_s19 = smul.u32 20, %s734_s15  ;;  %vm354_vm4 = vcmask 7168  }
   0xe   : > { %s598_s25 = smul.u32 12, %s734_s15 }
   0xf   : > { %s247_s22 = scalar_lea.vmem %s724_s0, %s597_s19  ;;  %s599_s29 = smul.u32 24, %s734_s15 }
  0x10   : > { %v279_v0 = vld [vmem:[%s247_s22 + $0x10] sm:$0x3]  ;;  %v277_v3 = vld [vmem:[%s247_s22 + $0x8] sm:$0xff]   ;;  %v589_v15 = vld [vmem:[%s247_s22] sm:$0xff]  ;;  %s255_s28 = scalar_lea.vmem %s726_s2, %s598_s25 }
  0x11   : > { %v296_v1 = vunpack.c.l.b16 %v279_v0  ;;  %v331_v2 = vunpack.c.l.bf16 %v279_v0  ;;  %v324_v4 = vunpack.c.l.bf16 %v277_v3  ;;  %v330_v5 = vunpack.c.h.bf16 %v277_v3  ;;  %v590_v11 = vld [vmem:[%s247_s22 + $0x8] sm:$0xff]  ;;  %s264_s6 = scalar_lea.vmem %s727_s3, %s599_s29  ;;  %s273_s9 = scalar_lea.vmem %s728_s4, %s599_s29 }
  0x13   : > { %v299_v6 = vpack.c.b16 %v296_v1, %v296_v1  ;;  %v333_v7 = vrot.slane %v331_v2, 4  ;;  %v326_v8 = vrot.slane %v324_v4, 4 }
  0x15   : > { %v308_v9 = vsel %vm306_vm0, %v299_v6, 0  ;;  %v335_v10 = vmax.f32 %v330_v5, %v333_v7  ;;  %v328_v12 = vmax.f32 %v324_v4, %v326_v8 }
  0x16   : > { %315 = vmatpush.bf16.msra.mxu0 %v308_v9 }
  0x17   : > { %v340_v13 = vrot.slane %v335_v10, 4 }
  0x19   : > { %v342_v14 = vmax.f32 %v328_v12, %v340_v13 }
  0x1a   : > { %316 = vmatpush.bf16.msra.mxu0 %v590_v11 }
  0x1b   : > { %v343_v16 = vpack.c.bf16 %v342_v14, %v342_v14 }
  0x1d   : > { %v349_v18 = vunpack.c.l.bf16 %v343_v16  ;;  %348 = vst [vmem:[%s255_s28 + $0x8] sm:$0x3] %v343_v16 }
  0x1e   : > { %317 = vmatpush.bf16.msra.mxu0 %v589_v15 }
  0x1f   : > { %v358_v19 = vsel %vm357_vm1, %v349_v18, 0.0  ;;  %v371_v26 = vmul.f32 %v349_v18, %v349_v18 }
  0x20   : > { %359 = vadd.xlane.f32.xlu1 %v358_v19 }
  0x21   : > { %586 = vmatmul.msk.bf16.vlgmr.msra.gmra.mxu0 %vm302_vm2, %v591_v17  ;;  %v372_v27 = vsel %vm357_vm1, %v371_v26, 0.0 }
  0x93   : > { %v360_v20 = vpop.xlane.xlu1 %359 }
  0x94   : > { %362 = vst.msk [vmem:[%s264_s6 + $0x10] sm:$0xf] %vm361_vm3, %v360_v20 }
  0x9e   : > { %v319_v21 = vpop.f32.mrf.mxu0 }
  0x9f   : > { %350 = vadd.xlane.f32.xlu0 %v319_v21  ;;  %v363_v22 = vmul.f32 %v319_v21, %v319_v21 }
  0xa1   : > { %365 = vadd.xlane.f32.xlu1 %v363_v22 }
  0xa6   : > { %v321_v23 = vpop.f32.mrf.mxu0 }
  0xa7   : > { %v595_v24 = vpack.c.bf16 %v321_v23, %v319_v21  ;;  %352 = vadd.xlane.f32.xlu0 %v321_v23  ;;  %v364_v25 = vmul.f32 %v321_v23, %v321_v23 }
  0xa9   : > { %596 = vst [vmem:[%s255_s28] sm:$0xff] %v595_v24   ;;  %367 = vadd.xlane.f32.xlu2 %v364_v25 }
  0xb1   : > { %373 = vadd.xlane.f32.xlu2 %v372_v27 }
 0x112   : > { %v351_v28 = vpop.xlane.xlu0 %350 }
 0x113   : > { %355 = vst.msk [vmem:[%s264_s6] sm:$0xff] %vm354_vm4, %v351_v28 }
 0x114   : > { %v366_v29 = vpop.xlane.xlu1 %365 }
 0x115   : > { %369 = vst.msk [vmem:[%s273_s9] sm:$0xff] %vm354_vm4, %v366_v29 }
 0x11a   : > { %v353_v30 = vpop.xlane.xlu0 %352 }
 0x11b   : > { %356 = vst.msk [vmem:[%s264_s6 + $0x8] sm:$0xff] %vm354_vm4, %v353_v30 }
 0x11c   : > { %v368_v31 = vpop.xlane.xlu2 %367 }
 0x11d   : > { %370 = vst.msk [vmem:[%s273_s9 + $0x8] sm:$0xff] %vm354_vm4, %v368_v31 }
 0x124   : > { %v374_v32 = vpop.xlane.xlu2 %373 }
 0x125   : > { %375 = vst.msk [vmem:[%s273_s9 + $0x10] sm:$0xf] %vm361_vm3, %v374_v32 }
 0x126 PF: > { %s15_s17 = sadd.s32 1, %s646_s17   ;;  %s729_s15 = smov %s642_s16 }
 0x127   : > { %p12_p5 = scmp.ge.s32.totalorder %s15_s17, 4   ;;  %s730_s16 = smov %s732_s18 }
 0x129   :  { %14 = sbr.rel (!%p12_p5) target bundleno = 2 (0x2), region = 82 }

// kernel: downsampler_block.3
= control target key start
LH: loop header
LB: loop body
LE: loop exit
PB: predicated region body
PF: predicated region fallthrough
CT: control target
= control target key end

     0   :  { %s427_s12 = smov 0   ;;  %s429_s13 = smov 0   ;;  %s478_s0 = inlined_call_operand.vmem [shape: bf16[2,20,128], index: 0, kind: input, shape index: {}]   ;;  %s479_s1 = inlined_call_operand.vmem [shape: f32[20,1], index: 1, kind: input, shape index: {}]   ;;  %s480_s2 = inlined_call_operand.vmem [shape: f32[20,1], index: 2, kind: input, shape index: {}]   ;;  %s481_s3 = inlined_call_operand.vmem [shape: f32[2,20,128], index: 3, kind: output, shape index: {}]  }
   0x1   :  { %s431_s14 = smov 0  }
   0x2 LB: > { %s25_s15 = sadd.s32 1, %s400_s13  ;;  %p343_p0 = scmp.ge.s32.totalorder %s404_s14, 1  ;;  %s404_s14 = sphi %s431_s14, %s13_s14   ;;  %s400_s13 = sphi %s429_s13, %s483_s13   ;;  %s396_s12 = sphi %s427_s12, %s482_s12  }
   0x3   : > { %p27_p1 = scmp.ge.s32.totalorder %s25_s15, 2  ;;  %p156_p2 = scmp.lt.s32.totalorder %s404_s14, 3 }
   0x5   : > { %s485_s15 = smov (%p27_p1, %s25_s15), 0  ;;  %p157_p3 = pnand %p343_p0, %p156_p2 }
   0x6   : > { %p186_p4 = scmp.lt.s32.totalorder (!%p157_p3), %s396_s12, 1 }
   0x7   : > { %160 = sbr.rel (%p157_p3) target bundleno = 144 (0x90), region = 32 }
   0xc   : > { %v210_v0 = vld [vmem:[%s479_s1 + $0x10] sm:$0xf]  ;;  %v208_v1 = vld [vmem:[%s479_s1] sm:$0xff]  ;;  %v406_v2 = vmov 0   ;;  %v230_v3 = vld [vmem:[%s480_s2 + $0x8] sm:$0xff]  ;;  %s487_s12 = smov (!%p186_p4, %s396_s12), 1 }
   0xd   : > { %380 = vset.pattern.permute.xlu1 %v406_v2  ;;  %379 = vset.pattern.permute.xlu0 %v406_v2  ;;  %v229_v4 = vld [vmem:[%s480_s2] sm:$0xff]  ;;  %v209_v5 = vld [vmem:[%s479_s1 + $0x8] sm:$0xff]  ;;  %v231_v6 = vld [vmem:[%s480_s2 + $0x10] sm:$0xf]  ;;  %s352_s28 = smul.u32 12, %s487_s12 }
   0xe   : > { %223 = vperm.xlu1 %380, %v210_v0   ;;  %213 = vperm.xlu0 %379, %v208_v1   ;;  %s353_s5 = smul.u32 24, %s487_s12 }
   0xf   : > { %381 = vset.pattern.permute.xlu2 %v406_v2  ;;  %s193_s4 = scalar_lea.vmem %s478_s0, %s352_s28 }
  0x10   : > { %239 = vperm.xlu2 %381, %v230_v3   ;;  %v204_v8 = vld [vmem:[%s193_s4 + $0x8] sm:$0x3]  ;;  %v349_v13 = vld [vmem:[%s193_s4] sm:$0xff]   ;;  %s201_s8 = scalar_lea.vmem %s481_s3, %s353_s5 }
  0x11   : > { %v207_v9 = vunpack.c.l.bf16 %v204_v8  ;;  %v350_v15 = vunpack.c.l.bf16 %v349_v13  ;;  %v351_v18 = vunpack.c.h.bf16 %v349_v13 }
  0x16   : > { %234 = vperm.xlu1 %380, %v229_v4   ;;  %218 = vperm.xlu0 %379, %v209_v5  }
  0x18   : > { %244 = vperm.xlu2 %381, %v231_v6  }
  0x6a   : > { %v240_v7 = vpop.permute.xlu2 %239 }
  0x72   : > { %v245_v10 = vpop.permute.xlu2 %244 }
  0x80   : > { %v224_v11 = vpop.permute.xlu1 %223  ;;  %v214_v12 = vpop.permute.xlu0 %213 }
  0x81   : > { %v228_v14 = vmul.f32 %v224_v11, %v207_v9  ;;  %v226_v19 = vmul.f32 %v350_v15, %v214_v12 }
  0x83   : > { %v249_v16 = vadd.f32 %v245_v10, %v228_v14 }
  0x85   : > { %v252_v17 = vmax.f32 %v249_v16, 0.0 }
  0x87   : > { %255 = vst [vmem:[%s201_s8 + $0x10] sm:$0xf] %v252_v17 }
  0x88   : > { %v235_v20 = vpop.permute.xlu1 %234  ;;  %v219_v21 = vpop.permute.xlu0 %218 }
  0x89   : > { %v247_v22 = vadd.f32 %v235_v20, %v226_v19  ;;  %v227_v23 = vmul.f32 %v351_v18, %v219_v21 }
  0x8b   : > { %v250_v24 = vmax.f32 %v247_v22, 0.0  ;;  %v248_v25 = vadd.f32 %v240_v7, %v227_v23 }
  0x8d   : > { %253 = vst [vmem:[%s201_s8] sm:$0xff] %v250_v24  ;;  %v251_v26 = vmax.f32 %v248_v25, 0.0 }
  0x8f   : > { %254 = vst [vmem:[%s201_s8 + $0x8] sm:$0xff] %v251_v26 }
  0x90 PF: > { %s13_s14 = sadd.s32 1, %s404_s14   ;;  %s482_s12 = smov %s400_s13 }
  0x91   : > { %p10_p5 = scmp.ge.s32.totalorder %s13_s14, 4   ;;  %s483_s13 = smov %s485_s15 }
  0x93   :  { %12 = sbr.rel (!%p10_p5) target bundleno = 2 (0x2), region = 62 }

</bundles_post_ra>
